<compile_context>
chip_gen: v6e
topology: v6e:2x2x1
jax: 0.10.0
libtpu: 0.0.40
codegen_flags: <defaults>
</compile_context>

<pallas_src>
import functools

import jax
import jax.numpy as jnp
from jax.experimental import pallas as pl
from jax.experimental.pallas import tpu as pltpu


def _mapper_kernel(x_a_ref, emb_ref,
                   wina_ref, winb_ref, wmid_ref, wlast_ref,
                   mw2_ref, mw3_ref, mw4_ref, bias_ref, out_ref):
    f32 = jnp.float32
    L = out_ref.shape[1]
    nmid = wmid_ref.shape[0]
    H1 = mw2_ref.shape[0]          # 256
    H2 = mw3_ref.shape[0]          # 128
    H3 = mw4_ref.shape[1]          # 64
    Lpad = wina_ref.shape[1] - H1  # lane-aligned start of the magnitude slice

    x_a = x_a_ref[...]
    emb = emb_ref[...]

    # ---- fused first layer for both branches ------------------------------
    # cat(x_a, emb) @ W is computed as the K-split x_a@Wa + emb@Wb, and the
    # tower / magnitude first-layer weights are packed along N:
    #   lanes [0:L]          -> residual-tower layer 0
    #   lanes [Lpad:Lpad+H1] -> magnitude-MLP layer 1 (BN pre-folded)
    z = (jnp.dot(x_a, wina_ref[...], preferred_element_type=f32)
         + jnp.dot(emb, winb_ref[...], preferred_element_type=f32))

    # ---- residual MLP tower (each sub-MLP == one Linear) -------------------
    x = z[:, :L] + bias_ref[0:1, :L]
    last_x = x
    for k in range(nmid + 1):                    # mlps[1:], static unroll
        if k < nmid:
            h = jnp.dot(x, wmid_ref[k], preferred_element_type=f32) \
                + bias_ref[1 + k:2 + k, :L]
        else:
            # final MLP: remove_final_bias=True -> no bias
            h = jnp.dot(x, wlast_ref[...], preferred_element_type=f32)
        if k % 2 == 0:
            x = h
        else:
            x = last_x + h
            last_x = x

    # ---- dir_vec = F.normalize(x, dim=1) == x / max(||x||, 1e-12) ----------
    sumsq = jnp.sum(x * x, axis=1, keepdims=True)
    dir_vec = x * jax.lax.rsqrt(jnp.maximum(sumsq, 1e-24))

    # ---- magnitude MLP (eval-mode BatchNorm pre-folded into the Linears) ---
    m = jnp.maximum(z[:, Lpad:Lpad + H1] + bias_ref[nmid + 1:nmid + 2, :H1], 0.0)
    m = jnp.maximum(jnp.dot(m, mw2_ref[...], preferred_element_type=f32)
                    + bias_ref[nmid + 2:nmid + 3, :H2], 0.0)
    m = jnp.maximum(jnp.dot(m, mw3_ref[...], preferred_element_type=f32)
                    + bias_ref[nmid + 3:nmid + 4, :H3], 0.0)
    # final Linear(64, 1, bias=False): VPU multiply + lane reduction instead
    # of a 1-column MXU matmul.
    magnitude = jnp.sum(m * mw4_ref[...], axis=-1, keepdims=True)

    out_ref[...] = dir_vec * magnitude


def _plan_batch(B, cap=2048):
    """Pick the batch tile TB and the padded batch Bp (multiple of TB).

    Small/medium B -> one whole-batch grid step (optimal on 1-TC chips).
    Large B        -> at least two grid steps (v7x megacore sharding),
                      tile capped so VMEM stays bounded on every generation.
    """
    if B <= 1024:
        TB = -(-B // 8) * 8                # round up to a multiple of 8
    else:
        TB = min(cap, -(-(-(-B // 2)) // 8) * 8)  # ~B/2, multiple of 8, capped
    Bp = -(-B // TB) * TB
    return TB, Bp


def prepare_params(params):
    """One-time parameter preparation (hoisted out of the forward hot path).

    Folds eval-mode BatchNorm into the magnitude-MLP Linears, splits the
    concat-input weights along K, fuses the two first-layer weights along N
    (tower columns padded to a 128-lane boundary), and packs all small bias
    vectors into a single array.
    """
    f32 = jnp.float32
    eps = 1e-5
    L = params["wlast"].shape[0]
    T = params["w0"].shape[0] - L
    nmid = params["wmid"].shape[0]

    def fold(w, b, g, be, mu, v):
        s = g * jax.lax.rsqrt(v + eps)               # (1, dout)
        return (w * s).astype(f32), ((b - mu) * s + be).astype(f32)

    mw1, mb1 = fold(params["mw1"], params["mb1"], params["g1"],
                    params["be1"], params["mu1"], params["v1"])
    mw2, mb2 = fold(params["mw2"], params["mb2"], params["g2"],
                    params["be2"], params["mu2"], params["v2"])
    mw3, mb3 = fold(params["mw3"], params["mb3"], params["g3"],
                    params["be3"], params["mu3"], params["v3"])

    H1, H2, H3 = mw1.shape[1], mw2.shape[1], mw3.shape[1]

    # K-split of the concat weights + N-fusion of the two first layers.
    Lpad = -(-L // 128) * 128                        # lane-aligned slice point
    w0a, w0b = params["w0"][:L], params["w0"][L:]
    mw1a, mw1b = mw1[:L], mw1[L:]

    def fuse(w_tower, w_mag, K):
        z = jnp.zeros((K, Lpad + H1), f32)
        z = z.at[:, :L].set(w_tower.astype(f32))
        z = z.at[:, Lpad:].set(w_mag)
        return z

    w_in_a = fuse(w0a, mw1a, L)
    w_in_b = fuse(w0b, mw1b, T)

    # pack all per-layer bias rows into a single array (one DMA, static slices)
    Cmax = max(L, H1, H2, H3)
    bias_pack = jnp.zeros((nmid + 4, Cmax), f32)
    bias_pack = bias_pack.at[0, :L].set(params["b0"].reshape(L))
    bias_pack = bias_pack.at[1:1 + nmid, :L].set(params["bmid"].astype(f32))
    bias_pack = bias_pack.at[nmid + 1, :H1].set(mb1.reshape(H1))
    bias_pack = bias_pack.at[nmid + 2, :H2].set(mb2.reshape(H2))
    bias_pack = bias_pack.at[nmid + 3, :H3].set(mb3.reshape(H3))

    prepared = {
        "w_in_a": w_in_a,
        "w_in_b": w_in_b,
        "wmid": params["wmid"].astype(f32),
        "wlast": params["wlast"].astype(f32),
        "mw2": mw2,
        "mw3": mw3,
        "mw4_row": params["mw4"].reshape(1, H3).astype(f32),
        "bias_pack": bias_pack,
    }
    return jax.tree_util.tree_map(jax.device_put, prepared)


@functools.partial(jax.jit, static_argnames=("batch_tile",))
def mapper_forward(x_a, embed_ab, prepared, *, batch_tile=None):
    f32 = jnp.float32
    B, L = x_a.shape
    T = embed_ab.shape[1]

    if batch_tile is None:
        TB, Bp = _plan_batch(B)
    else:
        TB = batch_tile
        Bp = -(-B // TB) * TB

    x_a = x_a.astype(f32)
    embed_ab = embed_ab.astype(f32)
    if Bp != B:
        pad = Bp - B
        x_a = jnp.pad(x_a, ((0, pad), (0, 0)))
        embed_ab = jnp.pad(embed_ab, ((0, pad), (0, 0)))

    plist = [prepared["w_in_a"], prepared["w_in_b"], prepared["wmid"],
             prepared["wlast"], prepared["mw2"], prepared["mw3"],
             prepared["mw4_row"], prepared["bias_pack"]]

    in_specs = [
        pl.BlockSpec((TB, L), lambda i: (i, 0)),        # x_a tile
        pl.BlockSpec((TB, T), lambda i: (i, 0)),        # embed tile
    ]
    # every parameter is loaded whole (block == full array) each grid step
    in_specs += [pl.BlockSpec(p.shape, lambda i, nd=p.ndim: (0,) * nd)
                 for p in plist]
    out_specs = pl.BlockSpec((TB, L), lambda i: (i, 0))

    out = pl.pallas_call(
        _mapper_kernel,
        out_shape=jax.ShapeDtypeStruct((Bp, L), f32),
        grid=(Bp // TB,),
        in_specs=in_specs,
        out_specs=out_specs,
        compiler_params=pltpu.CompilerParams(
            dimension_semantics=("parallel",)),
    )(x_a, embed_ab, *plist)

    return out[:B] if Bp != B else out


def init_params(key, latent_dim, text_dim, num_layers):
    """Deterministic synthetic parameters (eval-mode BN stats included)."""
    keys = iter(jax.random.split(key, 32))

    def nrm(shape, scale=0.1):
        return scale * jax.random.normal(next(keys), shape, dtype=jnp.float32)

    L, T = latent_dim, text_dim
    P = {}
    # residual tower: Linear(L+T,L)+b, (num_layers-1) x Linear(L,L)+b,
    # Linear(L,L) no bias.  Weights stored transposed: (in, out).
    P["w0"] = nrm((L + T, L))
    P["b0"] = nrm((1, L))
    nmid = num_layers - 1
    P["wmid"] = nrm((nmid, L, L))
    P["bmid"] = nrm((nmid, L))
    P["wlast"] = nrm((L, L))
    # magnitude MLP: (L+T)->256->128->64->1
    dims = [L + T, 256, 128, 64]
    for i in range(1, 4):
        din, dout = dims[i - 1], dims[i]
        P[f"mw{i}"] = nrm((din, dout))
        P[f"mb{i}"] = nrm((1, dout))
        P[f"g{i}"] = 1.0 + nrm((1, dout))                 # BN gamma
        P[f"be{i}"] = nrm((1, dout))                      # BN beta
        P[f"mu{i}"] = nrm((1, dout))                      # BN running_mean
        P[f"v{i}"] = 1.0 + jnp.abs(nrm((1, dout)))        # BN running_var
    P["mw4"] = nrm((64, 1))                               # final, no bias
    return P


def reference(x_a, emb, P):
    """Pure-JAX replica of the PyTorch forward (eval mode), un-folded BN."""
    x0 = jnp.concatenate([x_a, emb], axis=1)
    x = x0 @ P["w0"] + P["b0"]
    last_x = x
    nmid = P["wmid"].shape[0]
    for k in range(nmid + 1):
        if k < nmid:
            h = x @ P["wmid"][k] + P["bmid"][k][None, :]
        else:
            h = x @ P["wlast"]
        if k % 2 == 0:
            x = h
        else:
            x = last_x + h
            last_x = x
    norm = jnp.sqrt(jnp.sum(x * x, axis=1, keepdims=True))
    d = x / jnp.maximum(norm, 1e-12)

    def lbr(h, i):
        h = h @ P[f"mw{i}"] + P[f"mb{i}"]
        h = (h - P[f"mu{i}"]) * jax.lax.rsqrt(P[f"v{i}"] + 1e-5)
        return jnp.maximum(P[f"g{i}"] * h + P[f"be{i}"], 0.0)

    m = lbr(x0, 1)
    m = lbr(m, 2)
    m = lbr(m, 3)
    mag = m @ P["mw4"]
    return d * mag


if __name__ == "__main__":
    SHAPE_LATENT_DIM = 32
    TEXT_EMBED_DIM = 32
    NUM_LAYERS = 4
    BATCH = 16

    key = jax.random.PRNGKey(0)
    kx, ke, kp = jax.random.split(key, 3)
    x_a = jax.random.normal(kx, (BATCH, SHAPE_LATENT_DIM), dtype=jnp.float32)
    embed_ab = jax.random.normal(ke, (BATCH, TEXT_EMBED_DIM), dtype=jnp.float32)
    params = init_params(kp, SHAPE_LATENT_DIM, TEXT_EMBED_DIM, NUM_LAYERS)

    prepared = prepare_params(params)          # one-time, outside the hot path
    out = mapper_forward(x_a, embed_ab, prepared)
    out = jax.block_until_ready(out)

    ref = reference(x_a, embed_ab, params)
    assert out.shape == (BATCH, SHAPE_LATENT_DIM), out.shape
    max_err = float(jnp.max(jnp.abs(out - ref)))
    assert jnp.allclose(out, ref, atol=1e-4, rtol=1e-4), max_err

    print("KERNEL_OK")
</pallas_src>

<mosaic_0001>
module attributes {stable_mosaic.version = 11 : i64} {
  func.func @_mapper_kernel(%arg0: i32, %arg1: memref<16x32xf32, #tpu.memory_space<vmem>>, %arg2: memref<16x32xf32, #tpu.memory_space<vmem>>, %arg3: memref<32x384xf32, #tpu.memory_space<vmem>>, %arg4: memref<32x384xf32, #tpu.memory_space<vmem>>, %arg5: memref<3x32x32xf32, #tpu.memory_space<vmem>>, %arg6: memref<32x32xf32, #tpu.memory_space<vmem>>, %arg7: memref<256x128xf32, #tpu.memory_space<vmem>>, %arg8: memref<128x64xf32, #tpu.memory_space<vmem>>, %arg9: memref<1x64xf32, #tpu.memory_space<vmem>>, %arg10: memref<7x256xf32, #tpu.memory_space<vmem>>, %arg11: memref<16x32xf32, #tpu.memory_space<vmem>>) attributes {dimension_semantics = [#tpu.dimension_semantics<parallel>], iteration_bounds = array<i64: 1>, scalar_prefetch = 0 : i64, scratch_operands = 0 : i64, tpu.core_type = #tpu.core_type<tc>, window_params = [{transform_indices = @transform_0, window_bounds = array<i64: 16, 32>}, {transform_indices = @transform_1, window_bounds = array<i64: 16, 32>}, {pipeline_mode = #tpu.pipeline_mode<synchronous>, transform_indices = @transform_2, window_bounds = array<i64: 32, 384>}, {pipeline_mode = #tpu.pipeline_mode<synchronous>, transform_indices = @transform_3, window_bounds = array<i64: 32, 384>}, {pipeline_mode = #tpu.pipeline_mode<synchronous>, transform_indices = @transform_4, window_bounds = array<i64: 3, 32, 32>}, {pipeline_mode = #tpu.pipeline_mode<synchronous>, transform_indices = @transform_5, window_bounds = array<i64: 32, 32>}, {pipeline_mode = #tpu.pipeline_mode<synchronous>, transform_indices = @transform_6, window_bounds = array<i64: 256, 128>}, {pipeline_mode = #tpu.pipeline_mode<synchronous>, transform_indices = @transform_7, window_bounds = array<i64: 128, 64>}, {pipeline_mode = #tpu.pipeline_mode<synchronous>, transform_indices = @transform_8, window_bounds = array<i64: 1, 64>}, {pipeline_mode = #tpu.pipeline_mode<synchronous>, transform_indices = @transform_9, window_bounds = array<i64: 7, 256>}, {transform_indices = @transform_10, window_bounds = array<i64: 16, 32>}]} {
    %c0 = arith.constant 0 : index
    %c0_0 = arith.constant 0 : index
    %0 = vector.load %arg1[%c0, %c0_0] : memref<16x32xf32, #tpu.memory_space<vmem>>, vector<16x32xf32>
    %c0_1 = arith.constant 0 : index
    %c0_2 = arith.constant 0 : index
    %1 = vector.load %arg2[%c0_1, %c0_2] : memref<16x32xf32, #tpu.memory_space<vmem>>, vector<16x32xf32>
    %c0_3 = arith.constant 0 : index
    %c0_4 = arith.constant 0 : index
    %2 = vector.load %arg3[%c0_3, %c0_4] : memref<32x384xf32, #tpu.memory_space<vmem>>, vector<32x384xf32>
    %cst = arith.constant dense<0.000000e+00> : vector<16x384xf32>
    %3 = tpu.matmul %0, %2, %cst {dimension_numbers = #tpu.dot_dimension_numbers<[1], [0], [0], [1], [0, 0, 1, 1], [], []>} : vector<16x32xf32>, vector<32x384xf32>, vector<16x384xf32> -> vector<16x384xf32>
    %c0_5 = arith.constant 0 : index
    %c0_6 = arith.constant 0 : index
    %4 = vector.load %arg4[%c0_5, %c0_6] : memref<32x384xf32, #tpu.memory_space<vmem>>, vector<32x384xf32>
    %cst_7 = arith.constant dense<0.000000e+00> : vector<16x384xf32>
    %5 = tpu.matmul %1, %4, %cst_7 {dimension_numbers = #tpu.dot_dimension_numbers<[1], [0], [0], [1], [0, 0, 1, 1], [], []>} : vector<16x32xf32>, vector<32x384xf32>, vector<16x384xf32> -> vector<16x384xf32>
    %6 = arith.addf %3, %5 : vector<16x384xf32>
    %7 = vector.extract_strided_slice %6 {offsets = [0, 0], sizes = [16, 32], strides = [1, 1]} : vector<16x384xf32> to vector<16x32xf32>
    %c0_8 = arith.constant 0 : index
    %c0_9 = arith.constant 0 : index
    %8 = vector.load %arg10[%c0_8, %c0_9] : memref<7x256xf32, #tpu.memory_space<vmem>>, vector<1x32xf32>
    %9 = vector.broadcast %8 : vector<1x32xf32> to vector<16x32xf32>
    %10 = arith.addf %7, %9 : vector<16x32xf32>
    %c0_10 = arith.constant 0 : index
    %c0_11 = arith.constant 0 : index
    %c0_12 = arith.constant 0 : index
    %11 = vector.load %arg5[%c0_10, %c0_11, %c0_12] : memref<3x32x32xf32, #tpu.memory_space<vmem>>, vector<1x32x32xf32>
    %12 = vector.shape_cast %11 : vector<1x32x32xf32> to vector<32x32xf32>
    %cst_13 = arith.constant dense<0.000000e+00> : vector<16x32xf32>
    %13 = tpu.matmul %10, %12, %cst_13 {dimension_numbers = #tpu.dot_dimension_numbers<[1], [0], [0], [1], [0, 0, 1, 1], [], []>} : vector<16x32xf32>, vector<32x32xf32>, vector<16x32xf32> -> vector<16x32xf32>
    %c1 = arith.constant 1 : index
    %c0_14 = arith.constant 0 : index
    %14 = vector.load %arg10[%c1, %c0_14] : memref<7x256xf32, #tpu.memory_space<vmem>>, vector<1x32xf32>
    %15 = vector.broadcast %14 : vector<1x32xf32> to vector<16x32xf32>
    %16 = arith.addf %13, %15 : vector<16x32xf32>
    %c1_15 = arith.constant 1 : index
    %c0_16 = arith.constant 0 : index
    %c0_17 = arith.constant 0 : index
    %17 = vector.load %arg5[%c1_15, %c0_16, %c0_17] : memref<3x32x32xf32, #tpu.memory_space<vmem>>, vector<1x32x32xf32>
    %18 = vector.shape_cast %17 : vector<1x32x32xf32> to vector<32x32xf32>
    %cst_18 = arith.constant dense<0.000000e+00> : vector<16x32xf32>
    %19 = tpu.matmul %16, %18, %cst_18 {dimension_numbers = #tpu.dot_dimension_numbers<[1], [0], [0], [1], [0, 0, 1, 1], [], []>} : vector<16x32xf32>, vector<32x32xf32>, vector<16x32xf32> -> vector<16x32xf32>
    %c2 = arith.constant 2 : index
    %c0_19 = arith.constant 0 : index
    %20 = vector.load %arg10[%c2, %c0_19] : memref<7x256xf32, #tpu.memory_space<vmem>>, vector<1x32xf32>
    %21 = vector.broadcast %20 : vector<1x32xf32> to vector<16x32xf32>
    %22 = arith.addf %19, %21 : vector<16x32xf32>
    %23 = arith.addf %10, %22 : vector<16x32xf32>
    %c2_20 = arith.constant 2 : index
    %c0_21 = arith.constant 0 : index
    %c0_22 = arith.constant 0 : index
    %24 = vector.load %arg5[%c2_20, %c0_21, %c0_22] : memref<3x32x32xf32, #tpu.memory_space<vmem>>, vector<1x32x32xf32>
    %25 = vector.shape_cast %24 : vector<1x32x32xf32> to vector<32x32xf32>
    %cst_23 = arith.constant dense<0.000000e+00> : vector<16x32xf32>
    %26 = tpu.matmul %23, %25, %cst_23 {dimension_numbers = #tpu.dot_dimension_numbers<[1], [0], [0], [1], [0, 0, 1, 1], [], []>} : vector<16x32xf32>, vector<32x32xf32>, vector<16x32xf32> -> vector<16x32xf32>
    %c3 = arith.constant 3 : index
    %c0_24 = arith.constant 0 : index
    %27 = vector.load %arg10[%c3, %c0_24] : memref<7x256xf32, #tpu.memory_space<vmem>>, vector<1x32xf32>
    %28 = vector.broadcast %27 : vector<1x32xf32> to vector<16x32xf32>
    %29 = arith.addf %26, %28 : vector<16x32xf32>
    %c0_25 = arith.constant 0 : index
    %c0_26 = arith.constant 0 : index
    %30 = vector.load %arg6[%c0_25, %c0_26] : memref<32x32xf32, #tpu.memory_space<vmem>>, vector<32x32xf32>
    %cst_27 = arith.constant dense<0.000000e+00> : vector<16x32xf32>
    %31 = tpu.matmul %29, %30, %cst_27 {dimension_numbers = #tpu.dot_dimension_numbers<[1], [0], [0], [1], [0, 0, 1, 1], [], []>} : vector<16x32xf32>, vector<32x32xf32>, vector<16x32xf32> -> vector<16x32xf32>
    %32 = arith.addf %23, %31 : vector<16x32xf32>
    %33 = arith.mulf %32, %32 : vector<16x32xf32>
    %cst_28 = arith.constant dense<0.000000e+00> : vector<16xf32>
    %34 = vector.multi_reduction <add>, %33, %cst_28 [1] : vector<16x32xf32> to vector<16xf32>
    %35 = vector.shape_cast %34 : vector<16xf32> to vector<16x1xf32>
    %cst_29 = arith.constant 1.000000e-24 : f32
    %36 = vector.broadcast %cst_29 : f32 to vector<16x1xf32>
    %37 = arith.maximumf %35, %36 : vector<16x1xf32>
    %38 = math.rsqrt %37 : vector<16x1xf32>
    %39 = vector.broadcast %38 : vector<16x1xf32> to vector<16x32xf32>
    %40 = arith.mulf %32, %39 : vector<16x32xf32>
    %41 = vector.extract_strided_slice %6 {offsets = [0, 128], sizes = [16, 256], strides = [1, 1]} : vector<16x384xf32> to vector<16x256xf32>
    %c4 = arith.constant 4 : index
    %c0_30 = arith.constant 0 : index
    %42 = vector.load %arg10[%c4, %c0_30] : memref<7x256xf32, #tpu.memory_space<vmem>>, vector<1x256xf32>
    %43 = vector.broadcast %42 : vector<1x256xf32> to vector<16x256xf32>
    %44 = arith.addf %41, %43 : vector<16x256xf32>
    %cst_31 = arith.constant 0.000000e+00 : f32
    %45 = vector.broadcast %cst_31 : f32 to vector<16x256xf32>
    %46 = arith.maximumf %44, %45 : vector<16x256xf32>
    %c0_32 = arith.constant 0 : index
    %c0_33 = arith.constant 0 : index
    %47 = vector.load %arg7[%c0_32, %c0_33] : memref<256x128xf32, #tpu.memory_space<vmem>>, vector<256x128xf32>
    %cst_34 = arith.constant dense<0.000000e+00> : vector<16x128xf32>
    %48 = tpu.matmul %46, %47, %cst_34 {dimension_numbers = #tpu.dot_dimension_numbers<[1], [0], [0], [1], [0, 0, 1, 1], [], []>} : vector<16x256xf32>, vector<256x128xf32>, vector<16x128xf32> -> vector<16x128xf32>
    %c5 = arith.constant 5 : index
    %c0_35 = arith.constant 0 : index
    %49 = vector.load %arg10[%c5, %c0_35] : memref<7x256xf32, #tpu.memory_space<vmem>>, vector<1x128xf32>
    %50 = vector.broadcast %49 : vector<1x128xf32> to vector<16x128xf32>
    %51 = arith.addf %48, %50 : vector<16x128xf32>
    %cst_36 = arith.constant 0.000000e+00 : f32
    %52 = vector.broadcast %cst_36 : f32 to vector<16x128xf32>
    %53 = arith.maximumf %51, %52 : vector<16x128xf32>
    %c0_37 = arith.constant 0 : index
    %c0_38 = arith.constant 0 : index
    %54 = vector.load %arg8[%c0_37, %c0_38] : memref<128x64xf32, #tpu.memory_space<vmem>>, vector<128x64xf32>
    %cst_39 = arith.constant dense<0.000000e+00> : vector<16x64xf32>
    %55 = tpu.matmul %53, %54, %cst_39 {dimension_numbers = #tpu.dot_dimension_numbers<[1], [0], [0], [1], [0, 0, 1, 1], [], []>} : vector<16x128xf32>, vector<128x64xf32>, vector<16x64xf32> -> vector<16x64xf32>
    %c6 = arith.constant 6 : index
    %c0_40 = arith.constant 0 : index
    %56 = vector.load %arg10[%c6, %c0_40] : memref<7x256xf32, #tpu.memory_space<vmem>>, vector<1x64xf32>
    %57 = vector.broadcast %56 : vector<1x64xf32> to vector<16x64xf32>
    %58 = arith.addf %55, %57 : vector<16x64xf32>
    %cst_41 = arith.constant 0.000000e+00 : f32
    %59 = vector.broadcast %cst_41 : f32 to vector<16x64xf32>
    %60 = arith.maximumf %58, %59 : vector<16x64xf32>
    %c0_42 = arith.constant 0 : index
    %c0_43 = arith.constant 0 : index
    %61 = vector.load %arg9[%c0_42, %c0_43] : memref<1x64xf32, #tpu.memory_space<vmem>>, vector<1x64xf32>
    %62 = vector.broadcast %61 : vector<1x64xf32> to vector<16x64xf32>
    %63 = arith.mulf %60, %62 : vector<16x64xf32>
    %cst_44 = arith.constant dense<0.000000e+00> : vector<16xf32>
    %64 = vector.multi_reduction <add>, %63, %cst_44 [1] : vector<16x64xf32> to vector<16xf32>
    %65 = vector.shape_cast %64 : vector<16xf32> to vector<16x1xf32>
    %66 = vector.broadcast %65 : vector<16x1xf32> to vector<16x32xf32>
    %67 = arith.mulf %40, %66 : vector<16x32xf32>
    %c0_45 = arith.constant 0 : index
    %c0_46 = arith.constant 0 : index
    %68 = vector.load %arg11[%c0_45, %c0_46] : memref<16x32xf32, #tpu.memory_space<vmem>>, vector<16x32xf32>
    tpu.vector_store %arg11[%c0_45, %c0_46], %67 {strides = array<i32>} : memref<16x32xf32, #tpu.memory_space<vmem>>, vector<16x32xf32>,
    return
  }
  func.func @transform_0(%arg0: i32) -> (i32, i32) {
    %c0_i32 = arith.constant 0 : i32
    %c0_i32_0 = arith.constant 0 : i32
    return %arg0, %c0_i32 : i32, i32
  }
  func.func @transform_1(%arg0: i32) -> (i32, i32) {
    %c0_i32 = arith.constant 0 : i32
    %c0_i32_0 = arith.constant 0 : i32
    return %arg0, %c0_i32 : i32, i32
  }
  func.func @transform_2(%arg0: i32) -> (i32, i32) {
    %c0_i32 = arith.constant 0 : i32
    %c0_i32_0 = arith.constant 0 : i32
    %c0_i32_1 = arith.constant 0 : i32
    return %c0_i32, %c0_i32_0 : i32, i32
  }
  func.func @transform_3(%arg0: i32) -> (i32, i32) {
    %c0_i32 = arith.constant 0 : i32
    %c0_i32_0 = arith.constant 0 : i32
    %c0_i32_1 = arith.constant 0 : i32
    return %c0_i32, %c0_i32_0 : i32, i32
  }
  func.func @transform_4(%arg0: i32) -> (i32, i32, i32) {
    %c0_i32 = arith.constant 0 : i32
    %c0_i32_0 = arith.constant 0 : i32
    %c0_i32_1 = arith.constant 0 : i32
    %c0_i32_2 = arith.constant 0 : i32
    return %c0_i32, %c0_i32_0, %c0_i32_1 : i32, i32, i32
  }
  func.func @transform_5(%arg0: i32) -> (i32, i32) {
    %c0_i32 = arith.constant 0 : i32
    %c0_i32_0 = arith.constant 0 : i32
    %c0_i32_1 = arith.constant 0 : i32
    return %c0_i32, %c0_i32_0 : i32, i32
  }
  func.func @transform_6(%arg0: i32) -> (i32, i32) {
    %c0_i32 = arith.constant 0 : i32
    %c0_i32_0 = arith.constant 0 : i32
    %c0_i32_1 = arith.constant 0 : i32
    return %c0_i32, %c0_i32_0 : i32, i32
  }
  func.func @transform_7(%arg0: i32) -> (i32, i32) {
    %c0_i32 = arith.constant 0 : i32
    %c0_i32_0 = arith.constant 0 : i32
    %c0_i32_1 = arith.constant 0 : i32
    return %c0_i32, %c0_i32_0 : i32, i32
  }
  func.func @transform_8(%arg0: i32) -> (i32, i32) {
    %c0_i32 = arith.constant 0 : i32
    %c0_i32_0 = arith.constant 0 : i32
    %c0_i32_1 = arith.constant 0 : i32
    return %c0_i32, %c0_i32_0 : i32, i32
  }
  func.func @transform_9(%arg0: i32) -> (i32, i32) {
    %c0_i32 = arith.constant 0 : i32
    %c0_i32_0 = arith.constant 0 : i32
    %c0_i32_1 = arith.constant 0 : i32
    return %c0_i32, %c0_i32_0 : i32, i32
  }
  func.func @transform_10(%arg0: i32) -> (i32, i32) {
    %c0_i32 = arith.constant 0 : i32
    %c0_i32_0 = arith.constant 0 : i32
    return %arg0, %c0_i32 : i32, i32
  }
}

</mosaic_0001>

<bundles_post_ra>
// kernel: mapper_forward.1
= control target key start
LH: loop header
LB: loop body
LE: loop exit
PB: predicated region body
PF: predicated region fallthrough
CT: control target
= control target key end

     0   :  { %15 = vsyncpa [#allocation3], 0  ;;  %s1744_s0 = inlined_call_operand.hbm [shape: f32[16,32], index: 0, kind: input, shape index: {}]   ;;  %s1745_s1 = inlined_call_operand.hbm [shape: f32[16,32], index: 1, kind: input, shape index: {}]   ;;  %s1746_s2 = inlined_call_operand.vmem [shape: f32[32,384], index: 2, kind: input, shape index: {}]   ;;  %s1747_s3 = inlined_call_operand.vmem [shape: f32[32,384], index: 3, kind: input, shape index: {}]   ;;  %s1748_s4 = inlined_call_operand.hbm [shape: f32[3,32,32], index: 4, kind: input, shape index: {}]   ;;  %s1749_s5 = inlined_call_operand.hbm [shape: f32[32,32], index: 5, kind: input, shape index: {}]   ;;  %s1750_s6 = inlined_call_operand.hbm [shape: f32[256,128], index: 6, kind: input, shape index: {}]   ;;  %s1751_s7 = inlined_call_operand.vmem [shape: f32[128,64], index: 7, kind: input, shape index: {}]   ;;  %s1752_s8 = inlined_call_operand.vmem [shape: f32[1,64], index: 8, kind: input, shape index: {}]   ;;  %s1753_s9 = inlined_call_operand.hbm [shape: f32[7,256], index: 9, kind: input, shape index: {}]   ;;  %s1754_s10 = inlined_call_operand.hbm [shape: f32[16,32], index: 10, kind: output, shape index: {}]  }
   0x1   :  { %16 = vsyncpa [#allocation6], 0 }
   0x2   :  { %17 = vsyncpa [#allocation9], 0 }
   0x3   :  { %18 = vsyncpa [#allocation12], 0 }
   0x4   :  { %19 = vsyncpa [#allocation4], 0  ;;  %s1466_s13 = smov [#allocation5]   ;;  %s1467_s15 = smov [#allocation8]  }
   0x5   :  { %s37_s14 = sshll.u32 %s1466_s13, 4  ;;  %s65_s16 = sshll.u32 %s1467_s15, 4  ;;  %s38_s14 = int_to_ptr.vmem [resolvable:$true] %s37_s14  ;;  %s66_s16 = int_to_ptr.vmem [resolvable:$true] %s65_s16 }
   0x6   :  { %s1324_s17 = scalar_lea.vmem %s38_s14, 256  ;;  %p1329_p1 = scmp.lt.s32.totalorder %s38_s14, %s38_s14 }
   0x7   :  { %p1325_p0 = scmp.ne.s32.totalorder %s38_s14, %s1324_s17  ;;  %p1330_p2 = scmp.lt.s32.totalorder %s1324_s17, %s1324_s17 }
   0x9   :  { %p1331_p3 = por %p1330_p2, %p1329_p1 }
   0xb   :  { %p1332_p4 = pnand %p1331_p3, %p1325_p0 }
   0xd   :  { %1335 = shalt.err (!%p1332_p4)
}
   0xe   :  { %s1468_s18 = smov 128   ;;  %s1469_s19 = smov 8  }
   0xf   :  { %43 = dma.hbm_to_vmem [thread:$0]  %s1745_s1, 256, %s38_s14, [#allocation6], %s1468_s18, %s1468_s18, %s1469_s19  }
  0x10   :  { %s1344_s22 = scalar_lea.vmem %s66_s16, 512  ;;  %p1349_p6 = scmp.lt.s32.totalorder %s66_s16, %s66_s16 }
  0x11   :  { %p1345_p5 = scmp.ne.s32.totalorder %s66_s16, %s1344_s22  ;;  %p1350_p7 = scmp.lt.s32.totalorder %s1344_s22, %s1344_s22 }
  0x13   :  { %p1351_p8 = por %p1350_p7, %p1349_p6 }
  0x15   :  { %p1352_p9 = pnand %p1351_p8, %p1345_p5 }
  0x17   :  { %1355 = shalt.err (!%p1352_p9)
}
  0x18   :  { %71 = dma.hbm_to_vmem [thread:$0]  %s1749_s5, 512, %s66_s16, [#allocation9], %s1468_s18, %s1468_s18, %s1469_s19  }
  0x19   :  { %s1470_s25 = smov [#allocation2]   ;;  %s1471_s27 = smov [#allocation7]  }
  0x1a   :  { %s25_s26 = sshll.u32 %s1470_s25, 4  ;;  %s53_s28 = sshll.u32 %s1471_s27, 4  ;;  %s26_s26 = int_to_ptr.vmem [resolvable:$true] %s25_s26  ;;  %s54_s28 = int_to_ptr.vmem [resolvable:$true] %s53_s28 }
  0x1b   :  { %s1364_s1 = scalar_lea.vmem %s26_s26, 256  ;;  %p1369_p11 = scmp.lt.s32.totalorder %s26_s26, %s26_s26 }
  0x1c   :  { %p1365_p10 = scmp.ne.s32.totalorder %s26_s26, %s1364_s1  ;;  %p1370_p12 = scmp.lt.s32.totalorder %s1364_s1, %s1364_s1 }
  0x1e   :  { %p1371_p13 = por %p1370_p12, %p1369_p11 }
  0x20   :  { %p1372_p0 = pnand %p1371_p13, %p1365_p10 }
  0x22   :  { %1375 = shalt.err (!%p1372_p0)
}
  0x23   :  { %31 = dma.hbm_to_vmem [thread:$0]  %s1744_s0, 256, %s26_s26, [#allocation3], %s1468_s18, %s1468_s18, %s1469_s19  }
  0x24   :  { %s1384_s5 = scalar_lea.vmem %s54_s28, 1536  ;;  %p1389_p2 = scmp.lt.s32.totalorder %s54_s28, %s54_s28 }
  0x25   :  { %p1385_p1 = scmp.ne.s32.totalorder %s54_s28, %s1384_s5  ;;  %p1390_p3 = scmp.lt.s32.totalorder %s1384_s5, %s1384_s5 }
  0x27   :  { %p1391_p4 = por %p1390_p3, %p1389_p2 }
  0x29   :  { %p1392_p5 = pnand %p1391_p4, %p1385_p1 }
  0x2b   :  { %1395 = shalt.err (!%p1392_p5)
}
  0x2c   :  { %59 = dma.hbm_to_vmem [thread:$0]  %s1748_s4, 1536, %s54_s28, [#allocation6], %s1468_s18, %s1468_s18, %s1469_s19  }
  0x2d   :  { %s1472_s13 = smov [#allocation10]   ;;  %s1473_s15 = smov [#allocation11]  }
  0x2e   :  { %s77_s14 = sshll.u32 %s1472_s13, 4  ;;  %s94_s16 = sshll.u32 %s1473_s15, 4  ;;  %s78_s14 = int_to_ptr.vmem [resolvable:$true] %s77_s14  ;;  %s95_s16 = int_to_ptr.vmem [resolvable:$true] %s94_s16 }
  0x2f   :  { %s1404_s0 = scalar_lea.vmem %s78_s14, 4096  ;;  %p1409_p7 = scmp.lt.s32.totalorder %s78_s14, %s78_s14 }
  0x30   :  { %p1405_p6 = scmp.ne.s32.totalorder %s78_s14, %s1404_s0  ;;  %p1410_p8 = scmp.lt.s32.totalorder %s1404_s0, %s1404_s0 }
  0x32   :  { %p1411_p9 = por %p1410_p8, %p1409_p7 }
  0x34   :  { %p1412_p10 = pnand %p1411_p9, %p1405_p6 }
  0x36   :  { %1415 = shalt.err (!%p1412_p10)
}
  0x37   :  { %83 = dma.hbm_to_vmem [thread:$0]  %s1750_s6, 4096, %s78_s14, [#allocation9], %s1468_s18, %s1468_s18, %s1469_s19  }
  0x38   :  { %s1424_s4 = scalar_lea.vmem %s95_s16, 256  ;;  %p1429_p12 = scmp.lt.s32.totalorder %s95_s16, %s95_s16 }
  0x39   :  { %p1425_p11 = scmp.ne.s32.totalorder %s95_s16, %s1424_s4  ;;  %p1430_p13 = scmp.lt.s32.totalorder %s1424_s4, %s1424_s4 }
  0x3b   :  { %p1431_p0 = por %p1430_p13, %p1429_p12 }
  0x3d   :  { %p1432_p1 = pnand %p1431_p0, %p1425_p11 }
  0x3f   :  { %1435 = shalt.err (!%p1432_p1)
}
  0x40   :  { %97 = dma.hbm_to_vmem [thread:$0]  %s1753_s9, 256, %s95_s16, [#allocation12]  }
  0x41   :  { %1456 = dma.done.wait [#allocation3], 256  }
  0x42   :  { %1457 = vsyncadd [#allocation3], 4294967040 }
  0x43   :  { %1458 = dma.done.wait [#allocation6], 1792  }
  0x44   :  { %1459 = vsyncadd [#allocation6], 4294965504 }
  0x45   :  { %1460 = dma.done.wait [#allocation9], 4608  }
  0x46   :  { %1461 = vsyncadd [#allocation9], 4294962688 }
  0x47   :  { %1462 = dma.done.wait [#allocation12], 256  }
  0x48   :  { %1463 = vsyncadd [#allocation12], 4294967040  ;;  %v1474_v0 = vmov 0.0   ;;  %v142_v1 = vld [vmem:[%s1747_s3 + $0x50] sm:$0xff]  ;;  %v141_v2 = vld [vmem:[%s1747_s3 + $0x48] sm:$0xff]  ;;  %vm144_vm0 = vcmask 261120  }
  0x49   :  { %215 = vmatprep.mubr.f32.mxu0 %v1474_v0  ;;  %v139_v3 = vld [vmem:[%s1747_s3 + $0x38] sm:$0xff]  ;;  %175 = vmatprep.subr.mxu0 %v142_v1  ;;  %v138_v4 = vld [vmem:[%s1747_s3 + $0x30] sm:$0xff]  ;;  %v136_v5 = vld [vmem:[%s1747_s3 + $0x20] sm:$0xff]  ;;  %vm1061_vm1 = vcmask 523264   ;;  %s1475_s9 = smov [#allocation13]  }
  0x4a   :  { %176 = vmatpush1.msra.mxu0 %v141_v2  ;;  %v118_v6 = vld [vmem:[#allocation5] sm:$0xff]  ;;  %v135_v7 = vld [vmem:[%s1747_s3 + $0x18] sm:$0xff]  ;;  %v133_v8 = vld [vmem:[%s1747_s3 + $0x8] sm:$0xff] }
  0x4b   :  { %177 = vmatprep.subr.mxu0 %v139_v3  ;;  %1209 = vmatprep.mubr.msk.f32.mxu1 %vm144_vm0, %v118_v6  ;;  %v132_v9 = vld [vmem:[%s1747_s3] sm:$0xff]  ;;  %v130_v10 = vld [vmem:[%s1746_s2 + $0x50] sm:$0xff]  ;;  %v129_v11 = vld [vmem:[%s1746_s2 + $0x48] sm:$0xff] }
  0x4c   :  { %178 = vmatpush1.msra.mxu0 %v138_v4  ;;  %v127_v12 = vld [vmem:[%s1746_s2 + $0x38] sm:$0xff]  ;;  %v126_v13 = vld [vmem:[%s1746_s2 + $0x30] sm:$0xff]  ;;  %v124_v15 = vld [vmem:[%s1746_s2 + $0x20] sm:$0xff] }
  0x4d   :  { %179 = vmatprep.subr.mxu0 %v136_v5  ;;  %v119_v14 = vld [vmem:[#allocation5 + $0x8] sm:$0xff]  ;;  %v121_v17 = vld [vmem:[%s1746_s2 + $0x8] sm:$0xff]  ;;  %v120_v18 = vld [vmem:[%s1746_s2] sm:$0xff] }
  0x4e   :  { %180 = vmatpush1.msra.mxu0 %v135_v7  ;;  %v123_v16 = vld [vmem:[%s1746_s2 + $0x18] sm:$0xff]  ;;  %v116_v19 = vld [vmem:[#allocation2] sm:$0xff]  ;;  %v117_v20 = vld [vmem:[#allocation2 + $0x8] sm:$0xff] }
  0x4f   :  { %181 = vmatprep.subr.mxu0 %v133_v8  ;;  %v467_v21 = vld [vmem:[#allocation7 + $0x18] sm:$0xff]  ;;  %v466_v22 = vld [vmem:[#allocation7 + $0x10] sm:$0xff]  ;;  %v465_v23 = vld [vmem:[#allocation7 + $0x8] sm:$0xff] }
  0x50   :  { %182 = vmatpush1.msra.mxu0 %v132_v9  ;;  %v464_v24 = vld [vmem:[#allocation7] sm:$0xff]  ;;  %v143_v25 = vld [vmem:[%s1747_s3 + $0x58] sm:$0xff]  ;;  %v137_v27 = vld [vmem:[%s1747_s3 + $0x28] sm:$0xff] }
  0x51   :  { %1092 = vmatmul.mubr.msk.f32.vlgmr.msra.gmra.mxu0 %vm144_vm0, %v118_v6  ;;  %333 = vmatprep.subr.mxu0 %v130_v10  ;;  %v140_v26 = vld [vmem:[%s1747_s3 + $0x40] sm:$0xff]  ;;  %v134_v28 = vld [vmem:[%s1747_s3 + $0x10] sm:$0xff]  ;;  %v131_v29 = vld [vmem:[%s1746_s2 + $0x58] sm:$0xff] }
  0x52   :  { %334 = vmatpush1.msra.mxu0 %v129_v11  ;;  %221 = vmatprep.mubr.f32.mxu0 %v1474_v0  ;;  %v128_v30 = vld [vmem:[%s1746_s2 + $0x40] sm:$0xff]  ;;  %v125_v31 = vld [vmem:[%s1746_s2 + $0x28] sm:$0xff]  ;;  %v122_v32 = vld [vmem:[%s1746_s2 + $0x10] sm:$0xff] }
  0x53   :  { %335 = vmatprep.subr.mxu0 %v127_v12  ;;  %1201 = vmatprep.subr.mxu1 %v143_v25  ;;  %v554_v33 = vld [vmem:[#allocation7 + $0x38] sm:$0xff]  ;;  %v461_v39 = vld [vmem:[#allocation11] ss:$0 sm:$0xff]  ;;  %v553_v47 = vld [vmem:[#allocation7 + $0x30] sm:$0xff] }
  0x54   :  { %336 = vmatpush1.msra.mxu0 %v126_v13  ;;  %1202 = vmatpush3.msra.mxu1 %v143_v25  ;;  %v552_v48 = vld [vmem:[#allocation7 + $0x28] sm:$0xff]  ;;  %v551_v49 = vld [vmem:[#allocation7 + $0x20] sm:$0xff]  ;;  %v643_v50 = vld [vmem:[#allocation7 + $0x58] sm:$0xff] }
  0x55   :  { %1093 = vmatmul.mubr.msk.f32.gmra.mxu0 %vm144_vm0, %v119_v14  ;;  %337 = vmatprep.subr.mxu0 %v124_v15  ;;  %v468_v53 = vld [vmem:[#allocation11 + $0x1] ss:$0 sm:$0xff]  ;;  %v642_v57 = vld [vmem:[#allocation7 + $0x50] sm:$0xff]  ;;  %v641_v58 = vld [vmem:[#allocation7 + $0x48] sm:$0xff] }
  0x56   :  { %338 = vmatpush1.msra.mxu0 %v123_v16  ;;  %373 = vmatprep.mubr.f32.mxu0 %v1474_v0  ;;  %v640_v59 = vld [vmem:[#allocation7 + $0x40] sm:$0xff]  ;;  %v879_v60 = vld [vmem:[#allocation10 + $0xf8] sm:$0xff] }
  0x57   :  { %339 = vmatprep.subr.mxu0 %v121_v17  ;;  %1203 = vmatprep.subr.mxu1 %v140_v26  ;;  %v729_v61 = vld [vmem:[#allocation8 + $0x18] sm:$0xff]  ;;  %v828_v5 = vld [vmem:[#allocation11 + $0x4] ss:$8 sm:$0x3]  ;;  %v555_v8 = vld [vmem:[#allocation11 + $0x2] ss:$0 sm:$0xff] }
  0x58   :  { %340 = vmatpush1.msra.mxu0 %v120_v18  ;;  %1204 = vmatpush3.msra.mxu1 %v140_v26  ;;  %v863_v16 = vld [vmem:[#allocation10 + $0x78] sm:$0xff]  ;;  %v878_v18 = vld [vmem:[#allocation10 + $0xf0] sm:$0xff] }
  0x59   :  { %1096 = vmatmul.mubr.msk.f32.vlgmr.msra.gmra.mxu0 %vm144_vm0, %v116_v19  ;;  %1223 = vmatprep.subr.mxu0 %v467_v21  ;;  %v859_v25 = vld [vmem:[#allocation10 + $0x58] sm:$0xff]  ;;  %v874_v26 = vld [vmem:[#allocation10 + $0xd0] sm:$0xff] }
  0x5a   :  { %379 = vmatprep.mubr.f32.mxu0 %v1474_v0  ;;  %1224 = vmatpush3.msra.mxu0 %v467_v21  ;;  %v830_v0 = vlaneseq  ;;  %v861_v21 = vld [vmem:[#allocation10 + $0x68] sm:$0xff] }
  0x5b   :  { %1225 = vmatprep.subr.mxu0 %v466_v22  ;;  %1205 = vmatprep.subr.mxu1 %v137_v27 }
  0x5c   :  { %1226 = vmatpush3.msra.mxu0 %v466_v22  ;;  %1206 = vmatpush3.msra.mxu1 %v137_v27  ;;  %v1658_v2 = vshrl.u32 %v830_v0, 7  ;;  %v876_v22 = vld [vmem:[#allocation10 + $0xe0] sm:$0xff]  ;;  %v858_v27 = vld [vmem:[#allocation10 + $0x50] sm:$0xff] }
  0x5d   :  { %1097 = vmatmul.mubr.msk.f32.gmra.mxu0 %vm144_vm0, %v117_v20  ;;  %1227 = vmatprep.subr.mxu0 %v465_v23 }
  0x5e   :  { %1228 = vmatpush3.msra.mxu0 %v465_v23  ;;  %1207 = vmatprep.subr.mxu1 %v134_v28  ;;  %v836_v3 = vsub.s32 1, %v1658_v2  ;;  %v860_v23 = vld [vmem:[#allocation10 + $0x60] sm:$0xff] }
  0x5f   :  { %1229 = vmatprep.subr.mxu0 %v464_v24  ;;  %1208 = vmatpush3.msra.mxu1 %v134_v28  ;;  %v873_v28 = vld [vmem:[#allocation10 + $0xc8] sm:$0xff] }
  0x60   :  { %1230 = vmatpush3.msra.mxu0 %v464_v24  ;;  %1212 = vmatprep.subr.mxu1 %v131_v29  ;;  %v1661_v6 = vrot.slane %v828_v5, %v836_v3  ;;  %v875_v24 = vld [vmem:[#allocation10 + $0xd8] sm:$0xff]  ;;  %v972_v3 = vld [vmem:[%s1751_s7 + $0x70] sm:$0xff] }
  0x61   :  { %1210 = vmatmul.mubr.msk.f32.vlgmr.msra.gmra.mxu1 %vm144_vm0, %v119_v14  ;;  %1245 = vmatprep.subr.mxu0 %v643_v50 }
  0x62   :  { %1213 = vmatpush3.msra.mxu1 %v131_v29  ;;  %1220 = vmatprep.mubr.msk.f32.mxu1 %vm144_vm0, %v116_v19  ;;  %v862_v19 = vld [vmem:[#allocation10 + $0x70] sm:$0xff]  ;;  %v857_v29 = vld [vmem:[#allocation10 + $0x48] sm:$0xff] }
  0x63   :  { %1214 = vmatprep.subr.mxu1 %v128_v30 }
  0x64   :  { %1215 = vmatpush3.msra.mxu1 %v128_v30  ;;  %v872_v30 = vld [vmem:[#allocation10 + $0xc0] sm:$0xff] }
  0x65   :  { %1216 = vmatprep.subr.mxu1 %v125_v31 }
  0x66   :  { %1217 = vmatpush3.msra.mxu1 %v125_v31  ;;  %v856_v31 = vld [vmem:[#allocation10 + $0x40] sm:$0xff] }
  0x67   :  { %1218 = vmatprep.subr.mxu1 %v122_v32 }
  0x68   :  { %1219 = vmatpush3.msra.mxu1 %v122_v32  ;;  %v871_v32 = vld [vmem:[#allocation10 + $0xb8] sm:$0xff] }
  0x69   :  { %1221 = vmatmul.mubr.msk.f32.vlgmr.msra.gmra.mxu1 %vm144_vm0, %v117_v20  ;;  %1234 = vmatprep.subr.mxu1 %v554_v33  ;;  %v877_v20 = vld [vmem:[#allocation10 + $0xe8] sm:$0xff] }
  0x6a   :  { %1235 = vmatpush3.msra.mxu1 %v554_v33  ;;  %v855_v33 = vld [vmem:[#allocation10 + $0x38] sm:$0xff] }
  0x6b   :  { %1236 = vmatprep.subr.mxu1 %v553_v47 }
  0x6c   :  { %1237 = vmatpush3.msra.mxu1 %v553_v47  ;;  %v866_v47 = vld [vmem:[#allocation10 + $0x90] sm:$0xff] }
  0x6d   :  { %1238 = vmatprep.subr.mxu1 %v552_v48 }
  0x6e   :  { %1239 = vmatpush3.msra.mxu1 %v552_v48  ;;  %v850_v48 = vld [vmem:[#allocation10 + $0x10] sm:$0xff] }
  0x6f   :  { %1240 = vmatprep.subr.mxu1 %v551_v49 }
  0x70   :  { %1241 = vmatpush3.msra.mxu1 %v551_v49  ;;  %v865_v49 = vld [vmem:[#allocation10 + $0x88] sm:$0xff] }
  0x71   :  { %1256 = vmatprep.subr.mxu1 %v729_v61 }
 0x111   :  { %v217_v34 = vpop.f32.mrf.mxu0 }
 0x113   :  { %v219_v35 = vpop.f32.mrf.mxu0 }
 0x115   :  { %v223_v36 = vpop.f32.mrf.mxu0 }
 0x117   :  { %v1644_v37 = vpop.f32.mrf.mxu0 }
 0x119   :  { %v375_v38 = vpop.f32.mrf.mxu0 }
 0x11a   :  { %v376_v40 = vadd.f32 %v375_v38, %v217_v34  ;;  %v870_v34 = vld [vmem:[#allocation10 + $0xb0] sm:$0xff]  ;;  %v832_v38 = vsub.s32 0, %v1658_v2 }
 0x11b   :  { %v377_v41 = vpop.f32.mrf.mxu0 }
 0x11c   :  { %v462_v42 = vadd.f32 %v461_v39, %v376_v40  ;;  %v1646_v43 = vadd.f32 %v377_v41, %v219_v35  ;;  %v854_v35 = vld [vmem:[#allocation10 + $0x30] sm:$0xff]  ;;  %v868_v40 = vld [vmem:[#allocation10 + $0xa0] sm:$0xff] }
 0x11d   :  { %v381_v44 = vpop.f32.mrf.mxu0  ;;  %v852_v41 = vld [vmem:[#allocation10 + $0x20] sm:$0xff] }
 0x11e   :  { %v382_v45 = vadd.f32 %v381_v44, %v223_v36  ;;  %1231 = vmatprep.mubr.msk.f32.mxu0 %vm144_vm0, %v462_v42  ;;  %v869_v36 = vld [vmem:[#allocation10 + $0xa8] sm:$0xff]  ;;  %v833_v44 = vrot.slane %v828_v5, %v832_v38  ;;  %v970_v5 = vld [vmem:[%s1751_s7 + $0x60] sm:$0xff] }
 0x11f   :  { %v1650_v51 = vpop.f32.mrf.mxu0 }
 0x120   :  { %v463_v46 = vadd.f32 %v461_v39, %v382_v45  ;;  %v853_v39 = vld [vmem:[#allocation10 + $0x28] sm:$0xff]  ;;  %v851_v45 = vld [vmem:[#allocation10 + $0x18] sm:$0xff] }
 0x121   :  { %v1654_v62 = vpop.f32.mrf.mxu1 }
 0x122   :  { %1232 = vmatmul.mubr.msk.f32.vlgmr.msra.gmra.mxu0 %vm144_vm0, %v463_v46 }
 0x123   :  { %1246 = vmatpush3.msra.mxu0 %v643_v50  ;;  %v294_v63 = vpop.f32.mrf.mxu1  ;;  %v840_v50 = vadd.f32 %v833_v44, %v1646_v43 }
 0x124   :  { %1247 = vmatprep.subr.mxu0 %v642_v57 }
 0x125   :  { %1248 = vmatpush3.msra.mxu0 %v642_v57  ;;  %v844_v57 = vmax.f32 %v840_v50, 0.0 }
 0x126   :  { %1249 = vmatprep.subr.mxu0 %v641_v58 }
 0x127   :  { %1250 = vmatpush3.msra.mxu0 %v641_v58 }
 0x128   :  { %1251 = vmatprep.subr.mxu0 %v640_v59 }
 0x129   :  { %1252 = vmatpush3.msra.mxu0 %v640_v59  ;;  %v1656_v1 = vpop.f32.mrf.mxu1 }
 0x12a   :  { %1145 = vmatprep.subr.mxu0 %v879_v60  ;;  %v728_v60 = vld [vmem:[#allocation8 + $0x10] sm:$0xff] }
 0x12b   :  { %v452_v4 = vpop.f32.mrf.mxu1 }
 0x12c   :  { %v453_v7 = vadd.f32 %v452_v4, %v294_v63  ;;  %v644_v63 = vld [vmem:[#allocation11 + $0x3] ss:$0 sm:$0xff]  ;;  %v971_v4 = vld [vmem:[%s1751_s7 + $0x68] sm:$0xff] }
 0x12e   :  { %v841_v12 = vadd.f32 %v1661_v6, %v453_v7  ;;  %v968_v7 = vld [vmem:[%s1751_s7 + $0x50] sm:$0xff] }
 0x130   :  { %v845_v17 = vmax.f32 %v841_v12, 0.0  ;;  %v963_v12 = vld [vmem:[%s1751_s7 + $0x28] sm:$0xff] }
 0x1e2   :  { %v1233_v52 = vpop.f32.mrf.mxu0 }
 0x1e3   :  { %v547_v56 = vadd.f32 %v1233_v52, %v468_v53  ;;  %v384_v52 = vadd.f32 %v1650_v51, %v1644_v37  ;;  %v727_v37 = vld [vmem:[#allocation8 + $0x8] sm:$0xff]  ;;  %v726_v51 = vld [vmem:[#allocation8] sm:$0xff] }
 0x1e4   :  { %v541_v54 = vpop.f32.mrf.mxu0 }
 0x1e5   :  { %v542_v55 = vadd.f32 %v541_v54, %v468_v53  ;;  %v849_v53 = vld [vmem:[#allocation10 + $0x8] sm:$0xff]  ;;  %v842_v58 = vadd.f32 %v833_v44, %v384_v52 }
 0x1e7   :  { %1242 = vmatprep.mubr.msk.f32.mxu1 %vm144_vm0, %v542_v55  ;;  %v864_v55 = vld [vmem:[#allocation10 + $0x80] sm:$0xff]  ;;  %v846_v43 = vmax.f32 %v842_v58, 0.0 }
 0x1e8   :  { %1243 = vmatmul.mubr.msk.f32.vlgmr.msra.gmra.mxu1 %vm144_vm0, %v547_v56  ;;  %v848_v56 = vld [vmem:[#allocation10] sm:$0xff] }
 0x1e9   :  { %1257 = vmatpush3.msra.mxu1 %v729_v61  ;;  %v973_v61 = vld [vmem:[%s1751_s7 + $0x78] sm:$0xff] }
 0x1ea   :  { %1258 = vmatprep.subr.mxu1 %v728_v60 }
 0x1eb   :  { %1259 = vmatpush3.msra.mxu1 %v728_v60 }
 0x1ec   :  { %1260 = vmatprep.subr.mxu1 %v727_v37 }
 0x1ed   :  { %1261 = vmatpush3.msra.mxu1 %v727_v37 }
 0x1ee   :  { %1262 = vmatprep.subr.mxu1 %v726_v51 }
 0x1ef   :  { %1263 = vmatpush3.msra.mxu1 %v726_v51 }
 0x1f0   :  { %1267 = vmatprep.subr.mxu1 %v973_v61 }
 0x2a8   :  { %v1244_v9 = vpop.f32.mrf.mxu1 }
 0x2a9   :  { %v634_v10 = vadd.f32 %v1244_v9, %v555_v8  ;;  %v966_v9 = vld [vmem:[%s1751_s7 + $0x40] sm:$0xff] }
 0x2aa   :  { %v628_v11 = vpop.f32.mrf.mxu1 }
 0x2ab   :  { %v629_v13 = vadd.f32 %v628_v11, %v555_v8  ;;  %v1666_v15 = vadd.f32 %v634_v10, %v463_v46  ;;  %v458_v46 = vadd.f32 %v1656_v1, %v1654_v62  ;;  %v967_v8 = vld [vmem:[%s1751_s7 + $0x48] sm:$0xff]  ;;  %v965_v10 = vld [vmem:[%s1751_s7 + $0x38] sm:$0xff]  ;;  %v964_v11 = vld [vmem:[%s1751_s7 + $0x30] sm:$0xff] }
 0x2ad   :  { %v1664_v14 = vadd.f32 %v629_v13, %v462_v42  ;;  %v867_v42 = vld [vmem:[#allocation10 + $0x98] sm:$0xff]  ;;  %v843_v54 = vadd.f32 %v1661_v6, %v458_v46  ;;  %v962_v13 = vld [vmem:[%s1751_s7 + $0x20] sm:$0xff] }
 0x2ae   :  { %v969_v6 = vld [vmem:[%s1751_s7 + $0x58] sm:$0xff] }
 0x2af   :  { %1253 = vmatprep.mubr.msk.f32.mxu0 %vm144_vm0, %v1664_v14  ;;  %v847_v59 = vmax.f32 %v843_v54, 0.0 }
 0x2b0   :  { %1254 = vmatmul.mubr.msk.f32.vlgmr.msra.gmra.mxu0 %vm144_vm0, %v1666_v15 }
 0x2b1   :  { %1146 = vmatpush3.msra.mxu0 %v863_v16  ;;  %945 = vmatprep.mubr.f32.mxu0 %v845_v17  ;;  %v961_v16 = vld [vmem:[%s1751_s7 + $0x18] sm:$0xff]  ;;  %v960_v17 = vld [vmem:[%s1751_s7 + $0x10] sm:$0xff] }
 0x2b2   :  { %1147 = vmatprep.subr.mxu0 %v878_v18  ;;  %v959_v18 = vld [vmem:[%s1751_s7 + $0x8] sm:$0xff] }
 0x2b3   :  { %1148 = vmatpush3.msra.mxu0 %v862_v19 }
 0x2b4   :  { %1149 = vmatprep.subr.mxu0 %v877_v20  ;;  %v958_v20 = vld [vmem:[%s1751_s7] sm:$0xff] }
 0x2b5   :  { %1150 = vmatpush3.msra.mxu0 %v861_v21  ;;  %v880_v21 = vld [vmem:[#allocation11 + $0x5] ss:$0 sm:$0xff] }
 0x2b6   :  { %1151 = vmatprep.subr.mxu0 %v876_v22 }
 0x2b7   :  { %1152 = vmatpush3.msra.mxu0 %v860_v23 }
 0x2b8   :  { %1153 = vmatprep.subr.mxu0 %v875_v24 }
 0x2b9   :  { %1154 = vmatpush3.msra.mxu0 %v859_v25 }
 0x2ba   :  { %1155 = vmatprep.subr.mxu0 %v874_v26 }
 0x2bb   :  { %1156 = vmatpush3.msra.mxu0 %v858_v27 }
 0x2bc   :  { %1157 = vmatprep.subr.mxu0 %v873_v28 }
 0x2bd   :  { %1158 = vmatpush3.msra.mxu0 %v857_v29 }
 0x2be   :  { %1159 = vmatprep.subr.mxu0 %v872_v30 }
 0x2bf   :  { %1160 = vmatpush3.msra.mxu0 %v856_v31 }
 0x2c0   :  { %1161 = vmatprep.subr.mxu0 %v871_v32 }
 0x2c1   :  { %1162 = vmatpush3.msra.mxu0 %v855_v33 }
 0x2c2   :  { %1163 = vmatprep.subr.mxu0 %v870_v34 }
 0x2c3   :  { %1164 = vmatpush3.msra.mxu0 %v854_v35 }
 0x2c4   :  { %1165 = vmatprep.subr.mxu0 %v869_v36 }
 0x2c5   :  { %1166 = vmatpush3.msra.mxu0 %v853_v39 }
 0x2c6   :  { %1167 = vmatprep.subr.mxu0 %v868_v40  ;;  %v974_v40 = vld [vmem:[#allocation11 + $0x6] ss:$0 sm:$0xff] }
 0x2c7   :  { %1168 = vmatpush3.msra.mxu0 %v852_v41 }
 0x2c8   :  { %1169 = vmatprep.subr.mxu0 %v867_v42 }
 0x2c9   :  { %1170 = vmatpush3.msra.mxu0 %v851_v45 }
 0x2ca   :  { %1171 = vmatprep.subr.mxu0 %v866_v47 }
 0x2cb   :  { %1172 = vmatpush3.msra.mxu0 %v850_v48 }
 0x2cc   :  { %1173 = vmatprep.subr.mxu0 %v865_v49 }
 0x2cd   :  { %1174 = vmatpush3.msra.mxu0 %v849_v53 }
 0x2ce   :  { %1175 = vmatprep.subr.mxu0 %v864_v55 }
 0x2cf   :  { %1176 = vmatpush3.msra.mxu0 %v848_v56 }
 0x2d0   :  { %946 = vmatmul.mubr.f32.vlgmr.msra.gmra.mxu0 %v844_v57 }
 0x2d1   :  { %950 = vmatprep.mubr.f32.mxu0 %v847_v59 }
 0x2d4   :  { %951 = vmatmul.mubr.f32.gmra.mxu0 %v846_v43 }
 0x370   :  { %v1255_v62 = vpop.f32.mrf.mxu0 }
 0x371   :  { %v723_v2 = vadd.f32 %v1255_v62, %v644_v63 }
 0x372   :  { %v717_v0 = vpop.f32.mrf.mxu0 }
 0x373   :  { %v718_v1 = vadd.f32 %v717_v0, %v644_v63 }
 0x375   :  { %1264 = vmatprep.mubr.msk.f32.mxu1 %vm144_vm0, %v718_v1 }
 0x376   :  { %1265 = vmatmul.mubr.msk.f32.vlgmr.msra.gmra.mxu1 %vm144_vm0, %v723_v2 }
 0x377   :  { %1268 = vmatpush3.msra.mxu1 %v973_v61 }
 0x378   :  { %1269 = vmatprep.subr.mxu1 %v972_v3 }
 0x379   :  { %1270 = vmatpush3.msra.mxu1 %v972_v3 }
 0x37a   :  { %1271 = vmatprep.subr.mxu1 %v971_v4 }
 0x37b   :  { %1272 = vmatpush3.msra.mxu1 %v971_v4 }
 0x37c   :  { %1273 = vmatprep.subr.mxu1 %v970_v5 }
 0x37d   :  { %1274 = vmatpush3.msra.mxu1 %v970_v5 }
 0x37e   :  { %1275 = vmatprep.subr.mxu1 %v969_v6 }
 0x37f   :  { %1276 = vmatpush3.msra.mxu1 %v969_v6 }
 0x380   :  { %1277 = vmatprep.subr.mxu1 %v968_v7 }
 0x381   :  { %1278 = vmatpush3.msra.mxu1 %v968_v7 }
 0x382   :  { %1279 = vmatprep.subr.mxu1 %v967_v8 }
 0x383   :  { %1280 = vmatpush3.msra.mxu1 %v967_v8 }
 0x384   :  { %1281 = vmatprep.subr.mxu1 %v966_v9 }
 0x385   :  { %1282 = vmatpush3.msra.mxu1 %v966_v9 }
 0x386   :  { %1283 = vmatprep.subr.mxu1 %v965_v10 }
 0x387   :  { %1284 = vmatpush3.msra.mxu1 %v965_v10 }
 0x388   :  { %1285 = vmatprep.subr.mxu1 %v964_v11 }
 0x389   :  { %1286 = vmatpush3.msra.mxu1 %v964_v11 }
 0x38a   :  { %1287 = vmatprep.subr.mxu1 %v963_v12 }
 0x38b   :  { %1288 = vmatpush3.msra.mxu1 %v963_v12 }
 0x38c   :  { %1289 = vmatprep.subr.mxu1 %v962_v13 }
 0x38d   :  { %1290 = vmatpush3.msra.mxu1 %v962_v13 }
 0x38e   :  { %1291 = vmatprep.subr.mxu1 %v961_v16 }
 0x38f   :  { %1292 = vmatpush3.msra.mxu1 %v961_v16 }
 0x390   :  { %v1177_v19 = vpop.f32.mrf.mxu0  ;;  %1293 = vmatprep.subr.mxu1 %v960_v17 }
 0x391   :  { %1294 = vmatpush3.msra.mxu1 %v960_v17 }
 0x392   :  { %v1178_v22 = vpop.f32.mrf.mxu0  ;;  %1295 = vmatprep.subr.mxu1 %v959_v18 }
 0x393   :  { %v1179_v23 = vadd.f32 %v1178_v22, %v1177_v19  ;;  %1296 = vmatpush3.msra.mxu1 %v959_v18 }
 0x394   :  { %v1180_v24 = vpop.f32.mrf.mxu0  ;;  %1297 = vmatprep.subr.mxu1 %v958_v20 }
 0x395   :  { %v948_v25 = vadd.f32 %v1179_v23, %v880_v21  ;;  %1298 = vmatpush3.msra.mxu1 %v958_v20 }
 0x396   :  { %v1181_v26 = vpop.f32.mrf.mxu0 }
 0x397   :  { %v956_v27 = vmax.f32 %v948_v25, 0.0  ;;  %v1182_v28 = vadd.f32 %v1181_v26, %v1180_v24 }
 0x399   :  { %v953_v29 = vadd.f32 %v1182_v28, %v880_v21  ;;  %1299 = vmatprep.mubr.f32.mxu1 %v956_v27 }
 0x39b   :  { %v957_v30 = vmax.f32 %v953_v29, 0.0 }
 0x39d   :  { %1300 = vmatmul.mubr.f32.vlgmr.msra.gmra.mxu1 %v957_v30 }
 0x436   :  { %v1266_v31 = vpop.f32.mrf.mxu1 }
 0x437   :  { %v812_v33 = vadd.f32 %v1266_v31, %v1666_v15  ;;  %v1108_v15 = vld [vmem:[%s1752_s8] ss:$0 sm:$0xff]  ;;  %s1077_s8 = sshll.u32 %s1475_s9, 4  ;;  %s1078_s8 = int_to_ptr.vmem [resolvable:$true] %s1077_s8 }
 0x438   :  { %v802_v32 = vpop.f32.mrf.mxu1  ;;  %s1436_s27 = scalar_lea.vmem %s1078_s8, 256  ;;  %p1441_p3 = scmp.lt.s32.totalorder %s1078_s8, %s1078_s8 }
 0x439   :  { %v811_v34 = vadd.f32 %v802_v32, %v1664_v14  ;;  %v814_v38 = vmul.f32 %v812_v33, %v812_v33  ;;  %p1437_p2 = scmp.ne.s32.totalorder %s1078_s8, %s1436_s27  ;;  %p1442_p4 = scmp.lt.s32.totalorder %s1436_s27, %s1436_s27 }
 0x43b   :  { %v813_v35 = vmul.f32 %v811_v34, %v811_v34  ;;  %v818_v39 = vsel %vm144_vm0, %v814_v38, 0.0  ;;  %p1443_p5 = por %p1442_p4, %p1441_p3 }
 0x43d   :  { %v815_v36 = vsel %vm144_vm0, %v813_v35, 0.0  ;;  %p1444_p6 = pnand %p1443_p5, %p1437_p2 }
 0x43e   :  { %816 = vadd.xlane.f32.xlu0 %v815_v36 }
 0x442   :  { %819 = vadd.xlane.f32.xlu0 %v818_v39 }
 0x45d   :  { %v1301_v41 = vpop.f32.mrf.mxu1 }
 0x45e   :  { %v1047_v42 = vadd.f32 %v1301_v41, %v974_v40 }
 0x45f   :  { %v1041_v44 = vpop.f32.mrf.mxu1 }
 0x460   :  { %v1042_v45 = vadd.f32 %v1041_v44, %v974_v40  ;;  %v1051_v46 = vmax.f32 %v1047_v42, 0.0 }
 0x462   :  { %v1050_v47 = vmax.f32 %v1042_v45, 0.0  ;;  %v1060_v49 = vmul.f32 %v1108_v15, %v1051_v46 }
 0x464   :  { %v1059_v14 = vmul.f32 %v1108_v15, %v1050_v47  ;;  %v1065_v50 = vsel %vm1061_vm1, %v1060_v49, 0.0 }
 0x466   :  { %v1062_v48 = vsel %vm1061_vm1, %v1059_v14, 0.0 }
 0x467   :  { %1063 = vadd.xlane.f32.xlu1 %v1062_v48 }
 0x46b   :  { %1066 = vadd.xlane.f32.xlu1 %v1065_v50 }
 0x4c7   :  { %v817_v52 = vpop.xlane.xlu0 %816 }
 0x4c8   :  { %v821_v53 = vmax.f32 %v817_v52, 1e-24 }
 0x4ca   :  { %1312 = vrsqrt.f32 %v821_v53 }
 0x4cb   :  { %v820_v54 = vpop.xlane.xlu0 %819 }
 0x4cc   :  { %v822_v55 = vmax.f32 %v820_v54, 1e-24 }
 0x4ce   :  { %1314 = vrsqrt.f32 %v822_v55 }
 0x4d7   :  { %v1313_v56 = vpop.eup %1312 }
 0x4d8   :  { %v825_v57 = vmul.f32 %v1313_v56, %v811_v34 }
 0x4db   :  { %v1315_v58 = vpop.eup %1314 }
 0x4dc   :  { %v826_v60 = vmul.f32 %v1315_v58, %v812_v33 }
 0x4f0   :  { %v1064_v59 = vpop.xlane.xlu1 %1063 }
 0x4f1   :  { %v1068_v43 = vmul.f32 %v1064_v59, %v825_v57 }
 0x4f3   :  { %1070 = vst.msk [vmem:[#allocation13] sm:$0xff] %vm144_vm0, %v1068_v43 }
 0x4f4   :  { %v1067_v37 = vpop.xlane.xlu1 %1066 }
 0x4f5   :  { %v1069_v51 = vmul.f32 %v1067_v37, %v826_v60 }
 0x4f7   :  { %1071 = vst.msk [vmem:[#allocation13 + $0x8] sm:$0xff] %vm144_vm0, %v1069_v51 }
 0x4f8   :  { %1447 = shalt.err (!%p1444_p6)
}
 0x4f9   :  { %1083 = dma.vmem_to_hbm [thread:$0]  %s1078_s8, 256, %s1754_s10, [#allocation4], %s1468_s18, %s1468_s18, %s1469_s19  }
 0x4fa   :  { %1464 = dma.done.wait [#allocation4], 256  }
 0x4fb   :  { %1465 = vsyncadd [#allocation4], 4294967040 }
 0x4fc   :  { %1087 = vsyncpa [#allocation3], 1 }
 0x4fd   :  { %1088 = vsyncpa [#allocation6], 1 }
 0x4fe   :  { %1089 = vsyncpa [#allocation9], 1 }
 0x4ff   :  { %1090 = vsyncpa [#allocation12], 1 }
 0x500   :  { %1091 = vsyncpa [#allocation4], 1 }

</bundles_post_ra>
